<compile_context>
chip_gen: v7x
topology: tpu7x:2x2x1
jax: 0.10.0
libtpu: 0.0.40
codegen_flags: <defaults>
</compile_context>

<pallas_src>
import math
import functools

import jax
import jax.numpy as jnp
from jax.experimental import pallas as pl
from jax.experimental.pallas import tpu as pltpu


def build_pe_table(max_len: int, d_model: int) -> jnp.ndarray:
    """Sin/cos positional-encoding buffer, identical to the PyTorch module init."""
    position = jnp.arange(0, max_len, dtype=jnp.float32)[:, None]            # (L, 1)
    div_term = jnp.exp(
        jnp.arange(0, d_model, 2, dtype=jnp.float32) * (-math.log(10000.0) / d_model)
    )                                                                         # (D/2,)
    pe = jnp.zeros((max_len, d_model), dtype=jnp.float32)
    pe = pe.at[:, 0::2].set(jnp.sin(position * div_term))
    pe = pe.at[:, 1::2].set(jnp.cos(position * div_term))
    return pe


# ----------------------------- kernels --------------------------------------

def _pe_add_kernel(x_ref, pe_ref, o_ref):
    """Eval mode: y = x + pe (dropout is identity)."""
    o_ref[...] = (x_ref[...] + pe_ref[...]).astype(o_ref.dtype)


def _pe_add_dropout_kernel(x_ref, pe_ref, bits_ref, o_ref, *,
                           threshold: int, scale: float):
    """Training mode: y = dropout(x + pe) with inverted-dropout scaling.

    keep = bits >= floor(p * 2^32)  ->  P(keep) = 1 - p  (integer compare only).
    """
    y = x_ref[...] + pe_ref[...]
    keep = bits_ref[...] >= jnp.uint32(threshold)
    o_ref[...] = jnp.where(keep, y * jnp.float32(scale),
                           jnp.float32(0.0)).astype(o_ref.dtype)


# ----------------------------- wrapper ---------------------------------------

def _pick_tile_rows(n_rows: int, width: int, itemsize: int,
                    target_bytes: int = 1 << 20) -> int:
    """Row tile: multiple of 8, ~1 MiB per stream, never larger than the array."""
    if n_rows < 8:
        return n_rows
    rows_for_budget = max(1, target_bytes // (width * itemsize))
    t = min((n_rows // 8) * 8, (rows_for_budget // 8) * 8)
    return max(8, t)


def positional_encoding_forward(x: jnp.ndarray,
                                pe_table: jnp.ndarray,
                                *,
                                p: float = 0.1,
                                training: bool = False,
                                rng_key=None) -> jnp.ndarray:
    """x: (seq_len, d_model).  Returns x + pe[:seq_len] with (optional) dropout."""
    S, D = x.shape
    max_len, d_model = pe_table.shape
    assert d_model == D and max_len >= S

    if training and p >= 1.0:
        return jnp.zeros_like(x)

    use_dropout = training and p > 0.0

    # ---- layout: lane-dense (rows of 128) when d_model is narrow ----
    total = S * D
    flat = (D < 128) and (total % 128 == 0) and ((max_len * D) % 128 == 0)
    if flat:
        width = 128
        n_rows = total // 128
        x_v = x.reshape(n_rows, width)
        pe_v = pe_table.reshape((max_len * D) // 128, width)   # free row-major view
    else:
        width = D
        n_rows = S
        x_v = x
        pe_v = pe_table

    tile_r = _pick_tile_rows(n_rows, width, x.dtype.itemsize)
    if n_rows < 8:
        # Tiny input: the block must equal the full array dims, so slice the
        # (tiny) pe prefix.  All demo-scale shapes land here; real sequences
        # take the full-table-indexing path above.
        pe_v = pe_v[:n_rows]

    grid = (pl.cdiv(n_rows, tile_r),)
    row_spec = pl.BlockSpec((tile_r, width), lambda i: (i, 0))

    in_specs = [row_spec, row_spec]
    operands = [x_v, pe_v]

    if use_dropout:
        if rng_key is None:
            rng_key = jax.random.PRNGKey(0)
        bits = jax.random.bits(rng_key, (n_rows, width), dtype=jnp.uint32)
        in_specs.append(row_spec)
        operands.append(bits)
        threshold = min(int(round(p * float(1 << 32))), (1 << 32) - 1)
        kernel = functools.partial(_pe_add_dropout_kernel,
                                   threshold=threshold,
                                   scale=1.0 / (1.0 - p))
    else:
        kernel = _pe_add_kernel

    out = pl.pallas_call(
        kernel,
        out_shape=jax.ShapeDtypeStruct((n_rows, width), x.dtype),
        grid=grid,
        in_specs=in_specs,
        out_specs=row_spec,
        compiler_params=pltpu.CompilerParams(
            # No cross-iteration carry: legitimately parallel (2 TCs on v7x).
            dimension_semantics=("parallel",),
        ),
    )(*operands)

    return out.reshape(S, D)


# ----------------------------- demo / checks ---------------------------------

if __name__ == "__main__":
    seq_len, d_model, max_len = 8, 32, 64
    p = 0.1
    key = jax.random.PRNGKey(0)
    k_x, k_drop = jax.random.split(key)
    x = jax.random.normal(k_x, (seq_len, d_model), dtype=jnp.float32)

    pe_table = build_pe_table(max_len, d_model)
    ref = x + pe_table[:seq_len, :]

    # Eval mode (dropout = identity).
    out_eval = jax.block_until_ready(
        positional_encoding_forward(x, pe_table, p=p, training=False))
    assert out_eval.shape == x.shape
    assert jnp.allclose(out_eval, ref, atol=1e-6), "eval-mode mismatch"

    # Slightly larger case exercises the tiled, full-table-indexing path.
    S2, max_len2 = 128, 256
    x2 = jax.random.normal(k_x, (S2, d_model), dtype=jnp.float32)
    pe_table2 = build_pe_table(max_len2, d_model)
    out2 = jax.block_until_ready(
        positional_encoding_forward(x2, pe_table2, p=p, training=False))
    assert jnp.allclose(out2, x2 + pe_table2[:S2, :], atol=1e-6), "tiled-path mismatch"

    # Training mode: inverted dropout (mask bits from jax.random, applied in-kernel).
    out_train = jax.block_until_ready(
        positional_encoding_forward(x, pe_table, p=p, training=True, rng_key=k_drop))
    scaled = ref / (1.0 - p)
    ok = jnp.all(jnp.isclose(out_train, scaled, atol=1e-5) | (out_train == 0.0))
    assert bool(ok), "training-mode dropout mismatch"
    assert bool(jnp.any(out_train != 0.0)), "dropout dropped everything"

    print("KERNEL_OK")
</pallas_src>

<mosaic_0001>
module attributes {stable_mosaic.version = 11 : i64} {
  func.func @_pe_add_kernel(%arg0: i32, %arg1: memref<2x128xf32, #tpu.memory_space<vmem>>, %arg2: memref<2x128xf32, #tpu.memory_space<vmem>>, %arg3: memref<2x128xf32, #tpu.memory_space<vmem>>) attributes {dimension_semantics = [#tpu.dimension_semantics<parallel>], iteration_bounds = array<i64: 1>, scalar_prefetch = 0 : i64, scratch_operands = 0 : i64, tpu.core_type = #tpu.core_type<tc>, window_params = [{transform_indices = @transform_0, window_bounds = array<i64: 2, 128>}, {transform_indices = @transform_1, window_bounds = array<i64: 2, 128>}, {transform_indices = @transform_2, window_bounds = array<i64: 2, 128>}]} {
    %c0 = arith.constant 0 : index
    %c0_0 = arith.constant 0 : index
    %0 = vector.load %arg1[%c0, %c0_0] : memref<2x128xf32, #tpu.memory_space<vmem>>, vector<2x128xf32>
    %c0_1 = arith.constant 0 : index
    %c0_2 = arith.constant 0 : index
    %1 = vector.load %arg2[%c0_1, %c0_2] : memref<2x128xf32, #tpu.memory_space<vmem>>, vector<2x128xf32>
    %2 = arith.addf %0, %1 : vector<2x128xf32>
    %c0_3 = arith.constant 0 : index
    %c0_4 = arith.constant 0 : index
    %3 = vector.load %arg3[%c0_3, %c0_4] : memref<2x128xf32, #tpu.memory_space<vmem>>, vector<2x128xf32>
    tpu.vector_store %arg3[%c0_3, %c0_4], %2 {strides = array<i32>} : memref<2x128xf32, #tpu.memory_space<vmem>>, vector<2x128xf32>,
    return
  }
  func.func @transform_0(%arg0: i32) -> (i32, i32) {
    %c0_i32 = arith.constant 0 : i32
    %c0_i32_0 = arith.constant 0 : i32
    return %arg0, %c0_i32 : i32, i32
  }
  func.func @transform_1(%arg0: i32) -> (i32, i32) {
    %c0_i32 = arith.constant 0 : i32
    %c0_i32_0 = arith.constant 0 : i32
    return %arg0, %c0_i32 : i32, i32
  }
  func.func @transform_2(%arg0: i32) -> (i32, i32) {
    %c0_i32 = arith.constant 0 : i32
    %c0_i32_0 = arith.constant 0 : i32
    return %arg0, %c0_i32 : i32, i32
  }
}

</mosaic_0001>

<bundles_post_ra>
// kernel: tpu_custom_call.1
= control target key start
LH: loop header
LB: loop body
LE: loop exit
PB: predicated region body
PF: predicated region fallthrough
CT: control target
= control target key end

     0   :  { %7 = vsyncpa [#allocation3], 0  ;;  %s137_s0 = inlined_call_operand.hbm [shape: f32[2,128], index: 0, kind: input, shape index: {}]   ;;  %s138_s1 = inlined_call_operand.vmem [shape: f32[2,128], index: 1, kind: input, shape index: {}]   ;;  %s139_s2 = inlined_call_operand.hbm [shape: f32[2,128], index: 2, kind: output, shape index: {}]  }
   0x1   :  { %8 = vsyncpa [#allocation4], 0  ;;  %s93_s9 = smov [#allocation2]   ;;  %s45_s13 = scalar_lea.hbm %s137_s0, 32 }
   0x2   :  { %s15_s10 = sshll.u32 %s93_s9, 4  ;;  %p46_p0 = scmp.ne.s32.totalorder %s137_s0, %s45_s13  ;;  %s16_s10 = int_to_ptr.vmem [resolvable:$true] %s15_s10 }
   0x3   :  { %p49_p1 = scmp.lt.u32.totalorder %s45_s13, %s137_s0 }
   0x5   :  { %p51_p2 = pnand %p49_p1, %p46_p0 }
   0x7   :  { %54 = shalt.err (!%p51_p2)
}
   0x8   :  { %s55_s18 = scalar_lea.vmem %s16_s10, 32  ;;  %p60_p4 = scmp.lt.s32.totalorder %s16_s10, %s16_s10 }
   0x9   :  { %p56_p3 = scmp.ne.s32.totalorder %s16_s10, %s55_s18  ;;  %p61_p5 = scmp.lt.s32.totalorder %s55_s18, %s55_s18 }
   0xb   :  { %p62_p6 = por %p61_p5, %p60_p4 }
   0xd   :  { %p63_p7 = pnand %p62_p6, %p56_p3 }
   0xf   :  { %66 = shalt.err (!%p63_p7)
}
  0x10   :  { %18 = dma.hbm_to_vmem [thread:$0]  %s137_s0, 32, %s16_s10, [#allocation3]  }
  0x11   :  { %89 = dma.done.wait [#allocation3], 32  }
  0x12   :  { %90 = vsyncadd [#allocation3], 4294967264  ;;  %s94_s21 = smov [#allocation5]   ;;  %v24_v0 = vld [vmem:[#allocation2] sm:$0x3] }
  0x13   :  { %s34_s22 = sshll.u32 %s94_s21, 4  ;;  %v25_v1 = vld [vmem:[%s138_s1] sm:$0x3]  ;;  %s35_s22 = int_to_ptr.vmem [resolvable:$true] %s34_s22 }
  0x14   :  { %v26_v2 = vadd.f32 %v25_v1, %v24_v0  ;;  %s67_s25 = scalar_lea.vmem %s35_s22, 32  ;;  %p72_p9 = scmp.lt.s32.totalorder %s35_s22, %s35_s22 }
  0x15   :  { %p68_p8 = scmp.ne.s32.totalorder %s35_s22, %s67_s25  ;;  %p73_p10 = scmp.lt.s32.totalorder %s67_s25, %s67_s25 }
  0x16   :  { %27 = vst [vmem:[#allocation5] sm:$0x3] %v26_v2 }
  0x17   :  { %p74_p11 = por %p73_p10, %p72_p9 }
  0x19   :  { %p75_p12 = pnand %p74_p11, %p68_p8 }
  0x1b   :  { %78 = shalt.err (!%p75_p12)
}
  0x1c   :  { %s79_s27 = scalar_lea.hbm %s139_s2, 32 }
  0x1d   :  { %p80_p13 = scmp.ne.s32.totalorder %s139_s2, %s79_s27  ;;  %p83_p0 = scmp.lt.u32.totalorder %s79_s27, %s139_s2 }
  0x1f   :  { %p85_p1 = pnand %p83_p0, %p80_p13 }
  0x21   :  { %88 = shalt.err (!%p85_p1)
}
  0x22   :  { %37 = dma.vmem_to_hbm [thread:$0]  %s35_s22, 32, %s139_s2, [#allocation4]  }
  0x23   :  { %91 = dma.done.wait [#allocation4], 32  }
  0x24   :  { %92 = vsyncadd [#allocation4], 4294967264 }
  0x25   :  { %41 = vsyncpa [#allocation3], 1 }
  0x26   :  { %42 = vsyncpa [#allocation4], 1 }

</bundles_post_ra>
